<compile_context>
chip_gen: v7x
topology: tpu7x:2x2x1
jax: 0.10.0
libtpu: 0.0.40
codegen_flags: <defaults>
</compile_context>

<pallas_src>
import functools

import jax
import jax.numpy as jnp
from jax.experimental import pallas as pl
from jax.experimental.pallas import tpu as pltpu


def _round_up(x, m):
    return (x + m - 1) // m * m


# ----------------------------------------------------------------------------
# Kernel: one grid step = TT RNN timesteps for one batch tile.
# ----------------------------------------------------------------------------
def _rnn_seq_kernel(x_ref, h0_ref, wx_ref, wh_ref, b1_ref, w2_ref, b2_ref,
                    out_ref, h_ref, *, time_block):
    tb = pl.program_id(1)

    # Initialize the resident hidden-state block from h0 at the first
    # time-block of each batch tile.
    @pl.when(tb == 0)
    def _init():
        h_ref[...] = h0_ref[...]

    wx = wx_ref[...]
    wh = wh_ref[...]
    b1 = b1_ref[...]
    w2 = w2_ref[...]
    b2 = b2_ref[...]

    # Carry the hidden state in a value across the unrolled time-block;
    # write it back to the resident VMEM block once at the end.
    h = h_ref[...]                                               # (bB, Hp)
    for tt in range(time_block):                                 # static unroll
        x = x_ref[tt]                                            # (bB, Ip)
        pre = (
            jnp.dot(x, wx, preferred_element_type=jnp.float32)
            + jnp.dot(h, wh, preferred_element_type=jnp.float32)
            + b1                                                 # (1, Hp) bcast
        )
        # Sigmoid: exp lowers to the EUP slot (overlaps with MXU/VALU work).
        h = 1.0 / (1.0 + jnp.exp(-pre))                          # (bB, Hp)
        out_ref[tt] = (
            jnp.dot(h, w2, preferred_element_type=jnp.float32)
            + b2                                                 # (1, Op) bcast
        )
    h_ref[...] = h                                               # stays in VMEM


# ----------------------------------------------------------------------------
# One-time parameter preparation (split concat-weight, transpose, pad).
# ----------------------------------------------------------------------------
def prepare_params(params, input_size, hidden_size, output_size):
    I, H, O = input_size, hidden_size, output_size
    Ip, Hp, Op = _round_up(I, 128), _round_up(H, 128), _round_up(O, 128)

    w1 = params["w_in2hidden"].astype(jnp.float32)               # (H, I + H)
    wx_t = w1[:, :I].T                                           # (I, H)  x-part
    wh_t = w1[:, I:].T                                           # (H, H)  h-part
    w2_t = params["w_hidden2out"].astype(jnp.float32).T          # (H, O)

    def pad2(a, rows, cols):
        return jnp.pad(a, ((0, rows - a.shape[0]), (0, cols - a.shape[1])))

    return {
        "wx_t": pad2(wx_t, Ip, Hp),
        "wh_t": pad2(wh_t, Hp, Hp),
        "b1": pad2(params["b_in2hidden"].reshape(1, H).astype(jnp.float32), 1, Hp),
        "w2_t": pad2(w2_t, Hp, Op),
        "b2": pad2(params["b_hidden2out"].reshape(1, O).astype(jnp.float32), 1, Op),
        "dims": (I, H, O, Ip, Hp, Op),
    }


def _pick_time_block(T, max_block=8):
    """Largest divisor of T that is <= max_block (keeps the kernel exact)."""
    tt = min(T, max_block)
    while T % tt:
        tt -= 1
    return tt


# ----------------------------------------------------------------------------
# Sequence forward: one pallas_call for all T timesteps.
# ----------------------------------------------------------------------------
def ex_rnn_forward_seq(xs, hidden_state, prepared, *, batch_block=128,
                       max_time_block=8):
    """xs: (T, B, I), hidden_state: (B, H) -> (outputs (T, B, O), h_N (B, H))."""
    I, H, O, Ip, Hp, Op = prepared["dims"]
    T, B, _ = xs.shape

    Bp = _round_up(B, 8)                    # sublane alignment
    if Bp >= batch_block:
        bB = batch_block
        Bp = _round_up(Bp, bB)
    else:
        bB = Bp
    nb = Bp // bB

    TT = _pick_time_block(T, max_time_block)
    nt = T // TT

    xs_p = jnp.pad(xs.astype(jnp.float32), ((0, 0), (0, Bp - B), (0, Ip - I)))
    h0_p = jnp.pad(hidden_state.astype(jnp.float32), ((0, Bp - B), (0, Hp - H)))

    # NOTE(v7x): resident weights + one time-block of x/y here are << 64 MiB;
    # for large H/TT budget VMEM (weights + 2x double-buffered x,y blocks).
    kernel = functools.partial(_rnn_seq_kernel, time_block=TT)

    outs_p, h_n_p = pl.pallas_call(
        kernel,
        out_shape=(
            jax.ShapeDtypeStruct((T, Bp, Op), jnp.float32),
            jax.ShapeDtypeStruct((Bp, Hp), jnp.float32),
        ),
        grid=(nb, nt),
        in_specs=[
            pl.BlockSpec((TT, bB, Ip), lambda b, t: (t, b, 0)),   # x time-block
            pl.BlockSpec((bB, Hp),     lambda b, t: (b, 0)),      # h0
            pl.BlockSpec((Ip, Hp),     lambda b, t: (0, 0)),      # Wx^T (resident)
            pl.BlockSpec((Hp, Hp),     lambda b, t: (0, 0)),      # Wh^T (resident)
            pl.BlockSpec((1, Hp),      lambda b, t: (0, 0)),      # b1   (resident)
            pl.BlockSpec((Hp, Op),     lambda b, t: (0, 0)),      # W2^T (resident)
            pl.BlockSpec((1, Op),      lambda b, t: (0, 0)),      # b2   (resident)
        ],
        out_specs=(
            pl.BlockSpec((TT, bB, Op), lambda b, t: (t, b, 0)),   # y (lane-dense)
            pl.BlockSpec((bB, Hp),     lambda b, t: (b, 0)),      # running hidden
        ),
        compiler_params=pltpu.CompilerParams(
            dimension_semantics=("parallel", "arbitrary"),
        ),
    )(xs_p, h0_p, prepared["wx_t"], prepared["wh_t"], prepared["b1"],
      prepared["w2_t"], prepared["b2"])

    return outs_p[:, :B, :O], h_n_p[:B, :H]


# ----------------------------------------------------------------------------
# Single-step forward — matches ExRNN.forward(x, hidden_state) exactly.
# ----------------------------------------------------------------------------
def ex_rnn_forward(x, hidden_state, prepared):
    outs, h_n = ex_rnn_forward_seq(x[None, :, :], hidden_state, prepared)
    return outs[0], h_n


# ----------------------------------------------------------------------------
# Parameter init (mimics nn.Linear default init) and pure-JAX references.
# ----------------------------------------------------------------------------
def init_params(key, input_size, output_size, hidden_size):
    k1, k2, k3, k4 = jax.random.split(key, 4)
    fan1 = input_size + hidden_size
    bound1 = 1.0 / jnp.sqrt(fan1)
    fan2 = hidden_size
    bound2 = 1.0 / jnp.sqrt(fan2)
    return {
        "w_in2hidden": jax.random.uniform(
            k1, (hidden_size, fan1), jnp.float32, -bound1, bound1),
        "b_in2hidden": jax.random.uniform(
            k2, (hidden_size,), jnp.float32, -bound1, bound1),
        "w_hidden2out": jax.random.uniform(
            k3, (output_size, hidden_size), jnp.float32, -bound2, bound2),
        "b_hidden2out": jax.random.uniform(
            k4, (output_size,), jnp.float32, -bound2, bound2),
    }


def _reference_step(x, hidden_state, params):
    cat = jnp.concatenate([x, hidden_state], axis=1)
    hidden = jax.nn.sigmoid(cat @ params["w_in2hidden"].T + params["b_in2hidden"])
    output = hidden @ params["w_hidden2out"].T + params["b_hidden2out"]
    return output, hidden


def _reference_seq(xs, h0, params):
    def step(h, x):
        o, h_new = _reference_step(x, h, params)
        return h_new, o
    h_n, outs = jax.lax.scan(step, h0, xs)
    return outs, h_n


if __name__ == "__main__":
    batch = 2
    input_size = 16
    hidden_size = 32
    output_size = 8
    seq_len = 8

    key = jax.random.PRNGKey(0)
    kp, kx = jax.random.split(key)
    params = init_params(kp, input_size, output_size, hidden_size)
    prepared = prepare_params(params, input_size, hidden_size, output_size)

    xs = jax.random.normal(kx, (seq_len, batch, input_size), jnp.float32)
    h0 = jnp.zeros((batch, hidden_size), jnp.float32)   # init_hidden(bs)

    # --- single step (exact ExRNN.forward semantics) ---
    out, hidden = ex_rnn_forward(xs[0], h0, prepared)
    out = jax.block_until_ready(out)
    hidden = jax.block_until_ready(hidden)

    ref_out, ref_hidden = _reference_step(xs[0], h0, params)
    assert jnp.allclose(out, ref_out, atol=1e-4, rtol=1e-4)
    assert jnp.allclose(hidden, ref_hidden, atol=1e-4, rtol=1e-4)

    # --- fused multi-step sequence (the time loop lives inside one kernel) ---
    outs, h_n = ex_rnn_forward_seq(xs, h0, prepared)
    outs = jax.block_until_ready(outs)
    h_n = jax.block_until_ready(h_n)

    ref_outs, ref_h_n = _reference_seq(xs, h0, params)
    assert jnp.allclose(outs, ref_outs, atol=1e-3, rtol=1e-3)
    assert jnp.allclose(h_n, ref_h_n, atol=1e-3, rtol=1e-3)

    print("KERNEL_OK")
</pallas_src>

<mosaic_0001>
module attributes {stable_mosaic.version = 11 : i64} {
  func.func @_rnn_seq_kernel(%arg0: i32, %arg1: i32, %arg2: memref<1x8x128xf32, #tpu.memory_space<vmem>>, %arg3: memref<8x128xf32, #tpu.memory_space<vmem>>, %arg4: memref<128x128xf32, #tpu.memory_space<vmem>>, %arg5: memref<128x128xf32, #tpu.memory_space<vmem>>, %arg6: memref<1x128xf32, #tpu.memory_space<vmem>>, %arg7: memref<128x128xf32, #tpu.memory_space<vmem>>, %arg8: memref<1x128xf32, #tpu.memory_space<vmem>>, %arg9: memref<1x8x128xf32, #tpu.memory_space<vmem>>, %arg10: memref<8x128xf32, #tpu.memory_space<vmem>>) attributes {dimension_semantics = [#tpu.dimension_semantics<parallel>, #tpu.dimension_semantics<arbitrary>], iteration_bounds = array<i64: 1, 1>, scalar_prefetch = 0 : i64, scratch_operands = 0 : i64, tpu.core_type = #tpu.core_type<tc>, window_params = [{transform_indices = @transform_0, window_bounds = array<i64: 1, 8, 128>}, {transform_indices = @transform_1, window_bounds = array<i64: 8, 128>}, {pipeline_mode = #tpu.pipeline_mode<synchronous>, transform_indices = @transform_2, window_bounds = array<i64: 128, 128>}, {pipeline_mode = #tpu.pipeline_mode<synchronous>, transform_indices = @transform_3, window_bounds = array<i64: 128, 128>}, {pipeline_mode = #tpu.pipeline_mode<synchronous>, transform_indices = @transform_4, window_bounds = array<i64: 1, 128>}, {pipeline_mode = #tpu.pipeline_mode<synchronous>, transform_indices = @transform_5, window_bounds = array<i64: 128, 128>}, {pipeline_mode = #tpu.pipeline_mode<synchronous>, transform_indices = @transform_6, window_bounds = array<i64: 1, 128>}, {transform_indices = @transform_7, window_bounds = array<i64: 1, 8, 128>}, {transform_indices = @transform_8, window_bounds = array<i64: 8, 128>}]} {
    %c0_i32 = arith.constant 0 : i32
    %0 = arith.cmpi eq, %arg1, %c0_i32 : i32
    %1 = arith.extui %0 : i1 to i32
    %c0_i32_0 = arith.constant 0 : i32
    %2 = arith.cmpi ne, %1, %c0_i32_0 : i32
    scf.if %2 {
      %c0_25 = arith.constant 0 : index
      %c0_26 = arith.constant 0 : index
      %30 = vector.load %arg3[%c0_25, %c0_26] : memref<8x128xf32, #tpu.memory_space<vmem>>, vector<8x128xf32>
      %c0_27 = arith.constant 0 : index
      %c0_28 = arith.constant 0 : index
      %31 = vector.load %arg10[%c0_27, %c0_28] : memref<8x128xf32, #tpu.memory_space<vmem>>, vector<8x128xf32>
      tpu.vector_store %arg10[%c0_27, %c0_28], %30 {strides = array<i32>} : memref<8x128xf32, #tpu.memory_space<vmem>>, vector<8x128xf32>,
    } else {
    }
    %c0 = arith.constant 0 : index
    %c0_1 = arith.constant 0 : index
    %3 = vector.load %arg4[%c0, %c0_1] : memref<128x128xf32, #tpu.memory_space<vmem>>, vector<128x128xf32>
    %c0_2 = arith.constant 0 : index
    %c0_3 = arith.constant 0 : index
    %4 = vector.load %arg5[%c0_2, %c0_3] : memref<128x128xf32, #tpu.memory_space<vmem>>, vector<128x128xf32>
    %c0_4 = arith.constant 0 : index
    %c0_5 = arith.constant 0 : index
    %5 = vector.load %arg6[%c0_4, %c0_5] : memref<1x128xf32, #tpu.memory_space<vmem>>, vector<1x128xf32>
    %c0_6 = arith.constant 0 : index
    %c0_7 = arith.constant 0 : index
    %6 = vector.load %arg7[%c0_6, %c0_7] : memref<128x128xf32, #tpu.memory_space<vmem>>, vector<128x128xf32>
    %c0_8 = arith.constant 0 : index
    %c0_9 = arith.constant 0 : index
    %7 = vector.load %arg8[%c0_8, %c0_9] : memref<1x128xf32, #tpu.memory_space<vmem>>, vector<1x128xf32>
    %c0_10 = arith.constant 0 : index
    %c0_11 = arith.constant 0 : index
    %8 = vector.load %arg10[%c0_10, %c0_11] : memref<8x128xf32, #tpu.memory_space<vmem>>, vector<8x128xf32>
    %c0_12 = arith.constant 0 : index
    %c0_13 = arith.constant 0 : index
    %c0_14 = arith.constant 0 : index
    %9 = vector.load %arg2[%c0_12, %c0_13, %c0_14] : memref<1x8x128xf32, #tpu.memory_space<vmem>>, vector<1x8x128xf32>
    %10 = vector.shape_cast %9 : vector<1x8x128xf32> to vector<8x128xf32>
    %cst = arith.constant dense<0.000000e+00> : vector<8x128xf32>
    %11 = tpu.matmul %10, %3, %cst {dimension_numbers = #tpu.dot_dimension_numbers<[1], [0], [0], [1], [0, 0, 1, 1], [], []>} : vector<8x128xf32>, vector<128x128xf32>, vector<8x128xf32> -> vector<8x128xf32>
    %cst_15 = arith.constant dense<0.000000e+00> : vector<8x128xf32>
    %12 = tpu.matmul %8, %4, %cst_15 {dimension_numbers = #tpu.dot_dimension_numbers<[1], [0], [0], [1], [0, 0, 1, 1], [], []>} : vector<8x128xf32>, vector<128x128xf32>, vector<8x128xf32> -> vector<8x128xf32>
    %13 = arith.addf %11, %12 : vector<8x128xf32>
    %14 = vector.broadcast %5 : vector<1x128xf32> to vector<8x128xf32>
    %15 = arith.addf %13, %14 : vector<8x128xf32>
    %cst_16 = arith.constant 0.000000e+00 : f32
    %16 = vector.broadcast %cst_16 : f32 to vector<8x128xf32>
    %17 = arith.subf %16, %15 : vector<8x128xf32>
    %18 = math.exp %17 : vector<8x128xf32>
    %cst_17 = arith.constant 1.000000e+00 : f32
    %19 = vector.broadcast %cst_17 : f32 to vector<8x128xf32>
    %20 = arith.addf %19, %18 : vector<8x128xf32>
    %cst_18 = arith.constant 1.000000e+00 : f32
    %21 = vector.broadcast %cst_18 : f32 to vector<8x128xf32>
    %22 = arith.divf %21, %20 : vector<8x128xf32>
    %cst_19 = arith.constant dense<0.000000e+00> : vector<8x128xf32>
    %23 = tpu.matmul %22, %6, %cst_19 {dimension_numbers = #tpu.dot_dimension_numbers<[1], [0], [0], [1], [0, 0, 1, 1], [], []>} : vector<8x128xf32>, vector<128x128xf32>, vector<8x128xf32> -> vector<8x128xf32>
    %24 = vector.broadcast %7 : vector<1x128xf32> to vector<8x128xf32>
    %25 = arith.addf %23, %24 : vector<8x128xf32>
    %c0_20 = arith.constant 0 : index
    %c0_21 = arith.constant 0 : index
    %c0_22 = arith.constant 0 : index
    %26 = vector.load %arg9[%c0_20, %c0_21, %c0_22] : memref<1x8x128xf32, #tpu.memory_space<vmem>>, vector<1x8x128xf32>
    %27 = vector.shape_cast %26 : vector<1x8x128xf32> to vector<8x128xf32>
    %28 = vector.shape_cast %25 : vector<8x128xf32> to vector<1x8x128xf32>
    tpu.vector_store %arg9[%c0_20, %c0_21, %c0_22], %28 {strides = array<i32>} : memref<1x8x128xf32, #tpu.memory_space<vmem>>, vector<1x8x128xf32>,
    %c0_23 = arith.constant 0 : index
    %c0_24 = arith.constant 0 : index
    %29 = vector.load %arg10[%c0_23, %c0_24] : memref<8x128xf32, #tpu.memory_space<vmem>>, vector<8x128xf32>
    tpu.vector_store %arg10[%c0_23, %c0_24], %22 {strides = array<i32>} : memref<8x128xf32, #tpu.memory_space<vmem>>, vector<8x128xf32>,
    return
  }
  func.func @transform_0(%arg0: i32, %arg1: i32) -> (i32, i32, i32) {
    %c0_i32 = arith.constant 0 : i32
    %c0_i32_0 = arith.constant 0 : i32
    return %arg1, %arg0, %c0_i32 : i32, i32, i32
  }
  func.func @transform_1(%arg0: i32, %arg1: i32) -> (i32, i32) {
    %c0_i32 = arith.constant 0 : i32
    %c0_i32_0 = arith.constant 0 : i32
    return %arg0, %c0_i32 : i32, i32
  }
  func.func @transform_2(%arg0: i32, %arg1: i32) -> (i32, i32) {
    %c0_i32 = arith.constant 0 : i32
    %c0_i32_0 = arith.constant 0 : i32
    %c0_i32_1 = arith.constant 0 : i32
    return %c0_i32, %c0_i32_0 : i32, i32
  }
  func.func @transform_3(%arg0: i32, %arg1: i32) -> (i32, i32) {
    %c0_i32 = arith.constant 0 : i32
    %c0_i32_0 = arith.constant 0 : i32
    %c0_i32_1 = arith.constant 0 : i32
    return %c0_i32, %c0_i32_0 : i32, i32
  }
  func.func @transform_4(%arg0: i32, %arg1: i32) -> (i32, i32) {
    %c0_i32 = arith.constant 0 : i32
    %c0_i32_0 = arith.constant 0 : i32
    %c0_i32_1 = arith.constant 0 : i32
    return %c0_i32, %c0_i32_0 : i32, i32
  }
  func.func @transform_5(%arg0: i32, %arg1: i32) -> (i32, i32) {
    %c0_i32 = arith.constant 0 : i32
    %c0_i32_0 = arith.constant 0 : i32
    %c0_i32_1 = arith.constant 0 : i32
    return %c0_i32, %c0_i32_0 : i32, i32
  }
  func.func @transform_6(%arg0: i32, %arg1: i32) -> (i32, i32) {
    %c0_i32 = arith.constant 0 : i32
    %c0_i32_0 = arith.constant 0 : i32
    %c0_i32_1 = arith.constant 0 : i32
    return %c0_i32, %c0_i32_0 : i32, i32
  }
  func.func @transform_7(%arg0: i32, %arg1: i32) -> (i32, i32, i32) {
    %c0_i32 = arith.constant 0 : i32
    %c0_i32_0 = arith.constant 0 : i32
    return %arg1, %arg0, %c0_i32 : i32, i32, i32
  }
  func.func @transform_8(%arg0: i32, %arg1: i32) -> (i32, i32) {
    %c0_i32 = arith.constant 0 : i32
    %c0_i32_0 = arith.constant 0 : i32
    return %arg0, %c0_i32 : i32, i32
  }
}

</mosaic_0001>

<bundles_post_ra>
// kernel: tpu_custom_call.1
= control target key start
LH: loop header
LB: loop body
LE: loop exit
PB: predicated region body
PF: predicated region fallthrough
CT: control target
= control target key end

     0   :  { %14 = vsyncpa [#allocation3], 0  ;;  %s1010_s0 = inlined_call_operand.hbm [shape: f32[1,8,128], index: 0, kind: input, shape index: {}]   ;;  %s1011_s1 = inlined_call_operand.hbm [shape: f32[8,128], index: 1, kind: input, shape index: {}]   ;;  %s1012_s2 = inlined_call_operand.hbm [shape: f32[128,128], index: 2, kind: input, shape index: {}]   ;;  %s1013_s3 = inlined_call_operand.hbm [shape: f32[128,128], index: 3, kind: input, shape index: {}]   ;;  %s1014_s4 = inlined_call_operand.vmem [shape: f32[1,128], index: 4, kind: input, shape index: {}]   ;;  %s1015_s5 = inlined_call_operand.hbm [shape: f32[128,128], index: 5, kind: input, shape index: {}]   ;;  %s1016_s6 = inlined_call_operand.vmem [shape: f32[1,128], index: 6, kind: input, shape index: {}]   ;;  %s1017_s7 = inlined_call_operand.hbm [shape: f32[1,8,128], index: 7, kind: output, shape index: {0}]   ;;  %s1018_s8 = inlined_call_operand.hbm [shape: f32[8,128], index: 8, kind: output, shape index: {1}]  }
   0x1   :  { %15 = vsyncpa [#allocation6], 0 }
   0x2   :  { %16 = vsyncpa [#allocation9], 0 }
   0x3   :  { %17 = vsyncpa [#allocation4], 0 }
   0x4   :  { %18 = vsyncpa [#allocation13], 0  ;;  %s824_s27 = smov [#allocation5]   ;;  %s660_s9 = scalar_lea.hbm %s1011_s1, 128 }
   0x5   :  { %s35_s28 = sshll.u32 %s824_s27, 4  ;;  %p661_p0 = scmp.ne.s32.totalorder %s1011_s1, %s660_s9  ;;  %s36_s28 = int_to_ptr.vmem [resolvable:$true] %s35_s28 }
   0x6   :  { %p664_p1 = scmp.lt.u32.totalorder %s660_s9, %s1011_s1 }
   0x8   :  { %p666_p2 = pnand %p664_p1, %p661_p0 }
   0xa   :  { %669 = shalt.err (!%p666_p2)
}
   0xb   :  { %s670_s14 = scalar_lea.vmem %s36_s28, 128  ;;  %p675_p4 = scmp.lt.s32.totalorder %s36_s28, %s36_s28 }
   0xc   :  { %p671_p3 = scmp.ne.s32.totalorder %s36_s28, %s670_s14  ;;  %p676_p5 = scmp.lt.s32.totalorder %s670_s14, %s670_s14 }
   0xe   :  { %p677_p6 = por %p676_p5, %p675_p4 }
  0x10   :  { %p678_p7 = pnand %p677_p6, %p671_p3 }
  0x12   :  { %681 = shalt.err (!%p678_p7)
}
  0x13   :  { %38 = dma.hbm_to_vmem [thread:$0]  %s1011_s1, 128, %s36_s28, [#allocation6]  }
  0x14   :  { %s825_s17 = smov [#allocation8]   ;;  %s826_s19 = smov [#allocation2]  }
  0x15   :  { %s56_s18 = sshll.u32 %s825_s17, 4  ;;  %s25_s20 = sshll.u32 %s826_s19, 4  ;;  %s57_s18 = int_to_ptr.vmem [resolvable:$true] %s56_s18  ;;  %s26_s20 = int_to_ptr.vmem [resolvable:$true] %s25_s20 }
  0x16   :  { %s682_s23 = scalar_lea.hbm %s1013_s3, 2048 }
  0x17   :  { %p683_p8 = scmp.ne.s32.totalorder %s1013_s3, %s682_s23  ;;  %p686_p9 = scmp.lt.u32.totalorder %s682_s23, %s1013_s3 }
  0x19   :  { %p688_p10 = pnand %p686_p9, %p683_p8 }
  0x1b   :  { %691 = shalt.err (!%p688_p10)
}
  0x1c   :  { %s692_s1 = scalar_lea.vmem %s57_s18, 2048  ;;  %p697_p12 = scmp.lt.s32.totalorder %s57_s18, %s57_s18 }
  0x1d   :  { %p693_p11 = scmp.ne.s32.totalorder %s57_s18, %s692_s1  ;;  %p698_p13 = scmp.lt.s32.totalorder %s692_s1, %s692_s1 }
  0x1f   :  { %p699_p0 = por %p698_p13, %p697_p12 }
  0x21   :  { %p700_p1 = pnand %p699_p0, %p693_p11 }
  0x23   :  { %703 = shalt.err (!%p700_p1)
}
  0x24   :  { %s827_s28 = smov 128   ;;  %s828_s29 = smov 8  }
  0x25   :  { %62 = dma.hbm_to_vmem [thread:$0]  %s1013_s3, 2048, %s57_s18, [#allocation9], %s827_s28, %s827_s28, %s828_s29  }
  0x26   :  { %s704_s12 = scalar_lea.hbm %s1010_s0, 128 }
  0x27   :  { %p705_p2 = scmp.ne.s32.totalorder %s1010_s0, %s704_s12  ;;  %p708_p3 = scmp.lt.u32.totalorder %s704_s12, %s1010_s0 }
  0x29   :  { %p710_p4 = pnand %p708_p3, %p705_p2 }
  0x2b   :  { %713 = shalt.err (!%p710_p4)
}
  0x2c   :  { %s714_s17 = scalar_lea.vmem %s26_s20, 128  ;;  %p719_p6 = scmp.lt.s32.totalorder %s26_s20, %s26_s20 }
  0x2d   :  { %p715_p5 = scmp.ne.s32.totalorder %s26_s20, %s714_s17  ;;  %p720_p7 = scmp.lt.s32.totalorder %s714_s17, %s714_s17 }
  0x2f   :  { %p721_p8 = por %p720_p7, %p719_p6 }
  0x31   :  { %p722_p9 = pnand %p721_p8, %p715_p5 }
  0x33   :  { %725 = shalt.err (!%p722_p9)
}
  0x34   :  { %28 = dma.hbm_to_vmem [thread:$0]  %s1010_s0, 128, %s26_s20, [#allocation3]  }
  0x35   :  { %s829_s19 = smov [#allocation7]   ;;  %s830_s22 = smov [#allocation10]  }
  0x36   :  { %s44_s21 = sshll.u32 %s829_s19, 4  ;;  %s70_s23 = sshll.u32 %s830_s22, 4  ;;  %s45_s21 = int_to_ptr.vmem [resolvable:$true] %s44_s21  ;;  %s71_s23 = int_to_ptr.vmem [resolvable:$true] %s70_s23 }
  0x37   :  { %s726_s26 = scalar_lea.hbm %s1012_s2, 2048 }
  0x38   :  { %p727_p10 = scmp.ne.s32.totalorder %s1012_s2, %s726_s26  ;;  %p730_p11 = scmp.lt.u32.totalorder %s726_s26, %s1012_s2 }
  0x3a   :  { %p732_p12 = pnand %p730_p11, %p727_p10 }
  0x3c   :  { %735 = shalt.err (!%p732_p12)
}
  0x3d   :  { %s736_s0 = scalar_lea.vmem %s45_s21, 2048  ;;  %p741_p0 = scmp.lt.s32.totalorder %s45_s21, %s45_s21 }
  0x3e   :  { %p737_p13 = scmp.ne.s32.totalorder %s45_s21, %s736_s0  ;;  %p742_p1 = scmp.lt.s32.totalorder %s736_s0, %s736_s0 }
  0x40   :  { %p743_p2 = por %p742_p1, %p741_p0 }
  0x42   :  { %p744_p3 = pnand %p743_p2, %p737_p13 }
  0x44   :  { %747 = shalt.err (!%p744_p3)
}
  0x45   :  { %50 = dma.hbm_to_vmem [thread:$0]  %s1012_s2, 2048, %s45_s21, [#allocation6], %s827_s28, %s827_s28, %s828_s29  }
  0x46   :  { %s748_s13 = scalar_lea.hbm %s1015_s5, 2048 }
  0x47   :  { %p749_p4 = scmp.ne.s32.totalorder %s1015_s5, %s748_s13  ;;  %p752_p5 = scmp.lt.u32.totalorder %s748_s13, %s1015_s5 }
  0x49   :  { %p754_p6 = pnand %p752_p5, %p749_p4 }
  0x4b   :  { %757 = shalt.err (!%p754_p6)
}
  0x4c   :  { %s758_s3 = scalar_lea.vmem %s71_s23, 2048  ;;  %p763_p8 = scmp.lt.s32.totalorder %s71_s23, %s71_s23 }
  0x4d   :  { %p759_p7 = scmp.ne.s32.totalorder %s71_s23, %s758_s3  ;;  %p764_p9 = scmp.lt.s32.totalorder %s758_s3, %s758_s3 }
  0x4f   :  { %p765_p10 = por %p764_p9, %p763_p8 }
  0x51   :  { %p766_p11 = pnand %p765_p10, %p759_p7 }
  0x53   :  { %769 = shalt.err (!%p766_p11)
}
  0x54   :  { %76 = dma.hbm_to_vmem [thread:$0]  %s1015_s5, 2048, %s71_s23, [#allocation9], %s827_s28, %s827_s28, %s828_s29  }
  0x55   :  { %814 = dma.done.wait [#allocation3], 128  }
  0x56   :  { %815 = vsyncadd [#allocation3], 4294967168 }
  0x57   :  { %816 = dma.done.wait [#allocation6], 2176  }
  0x58   :  { %817 = vsyncadd [#allocation6], 4294965120 }
  0x59   :  { %818 = dma.done.wait [#allocation9], 4096  }
  0x5a   :  { %819 = vsyncadd [#allocation9], 4294963200  ;;  %v831_v0 = vmov 0.0|0.0   ;;  %vm832_vm0 = vmmov 0   ;;  %v833_v1 = vmov 0.0   ;;  %v116_v2 = vld [vmem:[#allocation8] sm:$0xff] }
  0x5b   :  { %572 = vmatprep.subr.bf16.mxu0 %v831_v0  ;;  %596 = vmatprep.subr.bf16.mxu1 %v831_v0  ;;  %v117_v3 = vld [vmem:[#allocation8 + $0x8] sm:$0xff]  ;;  %v100_v4 = vld [vmem:[#allocation7] sm:$0xff]  ;;  %v118_v7 = vld [vmem:[#allocation8 + $0x10] sm:$0xff]  ;;  %s834_s29 = smov [#allocation12]  }
  0x5c   :  { %499 = vmatprep.mubr.msk.f32.mxu0 %vm832_vm0, %v833_v1  ;;  %534 = vmatprep.mubr.msk.f32.mxu1 %vm832_vm0, %v833_v1  ;;  %v573_v5 = vpack.c.bf16 %v117_v3, %v116_v2  ;;  %v101_v6 = vld [vmem:[#allocation7 + $0x8] sm:$0xff]  ;;  %v119_v8 = vld [vmem:[#allocation8 + $0x18] sm:$0xff]  ;;  %v102_v10 = vld [vmem:[#allocation7 + $0x10] sm:$0xff]  ;;  %s399_s19 = sshll.u32 %s834_s29, 4  ;;  %s400_s19 = int_to_ptr.vmem [resolvable:$true] %s399_s19 }
  0x5d   :  { %v597_v9 = vpack.c.bf16 %v101_v6, %v100_v4  ;;  %v103_v11 = vld [vmem:[#allocation7 + $0x18] sm:$0xff]  ;;  %v576_v12 = vpack.c.bf16 %v119_v8, %v118_v7  ;;  %v120_v14 = vld [vmem:[#allocation8 + $0x20] sm:$0xff]  ;;  %v121_v15 = vld [vmem:[#allocation8 + $0x28] sm:$0xff]  ;;  %s770_s21 = scalar_lea.vmem %s400_s19, 128  ;;  %p775_p13 = scmp.lt.s32.totalorder %s400_s19, %s400_s19 }
  0x5e   :  { %574 = vmatpush3.bf16.msra.mxu0 %v573_v5  ;;  %v600_v13 = vpack.c.bf16 %v103_v11, %v102_v10  ;;  %v104_v16 = vld [vmem:[#allocation7 + $0x20] sm:$0xff]  ;;  %v105_v17 = vld [vmem:[#allocation7 + $0x28] sm:$0xff]  ;;  %v579_v18 = vpack.c.bf16 %v121_v15, %v120_v14  ;;  %v122_v20 = vld [vmem:[#allocation8 + $0x30] sm:$0xff]  ;;  %p771_p12 = scmp.ne.s32.totalorder %s400_s19, %s770_s21  ;;  %p776_p0 = scmp.lt.s32.totalorder %s770_s21, %s770_s21 }
  0x5f   :  { %598 = vmatpush3.bf16.msra.mxu1 %v597_v9  ;;  %575 = vmatprep.subr.bf16.mxu0 %v831_v0  ;;  %v603_v19 = vpack.c.bf16 %v105_v17, %v104_v16  ;;  %v123_v21 = vld [vmem:[#allocation8 + $0x38] sm:$0xff]  ;;  %v106_v22 = vld [vmem:[#allocation7 + $0x30] sm:$0xff]  ;;  %v124_v26 = vld [vmem:[#allocation8 + $0x40] sm:$0xff] }
  0x60   :  { %599 = vmatprep.subr.bf16.mxu1 %v831_v0  ;;  %v107_v23 = vld [vmem:[#allocation7 + $0x38] sm:$0xff]  ;;  %v582_v24 = vpack.c.bf16 %v123_v21, %v122_v20  ;;  %v125_v27 = vld [vmem:[#allocation8 + $0x48] sm:$0xff]  ;;  %v108_v28 = vld [vmem:[#allocation7 + $0x40] sm:$0xff]  ;;  %p777_p1 = por %p776_p0, %p775_p13 }
  0x61   :  { %v606_v25 = vpack.c.bf16 %v107_v23, %v106_v22  ;;  %v109_v29 = vld [vmem:[#allocation7 + $0x48] sm:$0xff]  ;;  %v585_v30 = vpack.c.bf16 %v125_v27, %v124_v26  ;;  %v126_v32 = vld [vmem:[#allocation8 + $0x50] sm:$0xff]  ;;  %v127_v33 = vld [vmem:[#allocation8 + $0x58] sm:$0xff] }
  0x62   :  { %577 = vmatpush3.bf16.msra.mxu0 %v576_v12  ;;  %v609_v31 = vpack.c.bf16 %v109_v29, %v108_v28  ;;  %v110_v34 = vld [vmem:[#allocation7 + $0x50] sm:$0xff]  ;;  %v111_v35 = vld [vmem:[#allocation7 + $0x58] sm:$0xff]  ;;  %v588_v36 = vpack.c.bf16 %v127_v33, %v126_v32  ;;  %v128_v38 = vld [vmem:[#allocation8 + $0x60] sm:$0xff]  ;;  %p778_p2 = pnand %p777_p1, %p771_p12 }
  0x63   :  { %601 = vmatpush3.bf16.msra.mxu1 %v600_v13  ;;  %578 = vmatprep.subr.bf16.mxu0 %v831_v0  ;;  %v612_v37 = vpack.c.bf16 %v111_v35, %v110_v34  ;;  %v129_v39 = vld [vmem:[#allocation8 + $0x68] sm:$0xff]  ;;  %v112_v40 = vld [vmem:[#allocation7 + $0x60] sm:$0xff]  ;;  %v130_v44 = vld [vmem:[#allocation8 + $0x70] sm:$0xff] }
  0x64   :  { %602 = vmatprep.subr.bf16.mxu1 %v831_v0  ;;  %v113_v41 = vld [vmem:[#allocation7 + $0x68] sm:$0xff]  ;;  %v591_v42 = vpack.c.bf16 %v129_v39, %v128_v38  ;;  %v131_v45 = vld [vmem:[#allocation8 + $0x78] sm:$0xff]  ;;  %v114_v46 = vld [vmem:[#allocation7 + $0x70] sm:$0xff] }
  0x65   :  { %v615_v43 = vpack.c.bf16 %v113_v41, %v112_v40  ;;  %v115_v47 = vld [vmem:[#allocation7 + $0x78] sm:$0xff]  ;;  %v594_v48 = vpack.c.bf16 %v131_v45, %v130_v44  ;;  %v151_v51 = vld [vmem:[#allocation2] sm:$0xff]  ;;  %v133_v52 = vld [vmem:[#allocation10] sm:$0xff] }
  0x66   :  { %580 = vmatpush3.bf16.msra.mxu0 %v579_v18  ;;  %v618_v49 = vpack.c.bf16 %v115_v47, %v114_v46  ;;  %v98_v50 = vld [vmem:[#allocation5] sm:$0xff]  ;;  %v134_v53 = vld [vmem:[#allocation10 + $0x8] sm:$0xff]  ;;  %v135_v55 = vld [vmem:[#allocation10 + $0x10] sm:$0xff] }
  0x67   :  { %604 = vmatpush3.bf16.msra.mxu1 %v603_v19  ;;  %581 = vmatprep.subr.bf16.mxu0 %v831_v0  ;;  %v621_v54 = vpack.c.bf16 %v134_v53, %v133_v52  ;;  %v136_v56 = vld [vmem:[#allocation10 + $0x18] sm:$0xff]  ;;  %v137_v58 = vld [vmem:[#allocation10 + $0x20] sm:$0xff]  ;;  %v138_v59 = vld [vmem:[#allocation10 + $0x28] sm:$0xff] }
  0x68   :  { %605 = vmatprep.subr.bf16.mxu1 %v831_v0  ;;  %v624_v57 = vpack.c.bf16 %v136_v56, %v135_v55  ;;  %v627_v60 = vpack.c.bf16 %v138_v59, %v137_v58  ;;  %v139_v61 = vld [vmem:[#allocation10 + $0x30] sm:$0xff]  ;;  %v140_v62 = vld [vmem:[#allocation10 + $0x38] sm:$0xff]  ;;  %v142_v2 = vld [vmem:[#allocation10 + $0x48] sm:$0xff] }
  0x69   :  { %v630_v63 = vpack.c.bf16 %v140_v62, %v139_v61  ;;  %v143_v4 = vld [vmem:[#allocation10 + $0x50] sm:$0xff]  ;;  %v144_v5 = vld [vmem:[#allocation10 + $0x58] sm:$0xff]  ;;  %v145_v7 = vld [vmem:[#allocation10 + $0x60] sm:$0xff] }
  0x6a   :  { %583 = vmatpush3.bf16.msra.mxu0 %v582_v24  ;;  %v636_v6 = vpack.c.bf16 %v144_v5, %v143_v4  ;;  %v146_v8 = vld [vmem:[#allocation10 + $0x68] sm:$0xff]  ;;  %v147_v10 = vld [vmem:[#allocation10 + $0x70] sm:$0xff]  ;;  %v148_v11 = vld [vmem:[#allocation10 + $0x78] sm:$0xff] }
  0x6b   :  { %607 = vmatpush3.bf16.msra.mxu1 %v606_v25  ;;  %584 = vmatprep.subr.bf16.mxu0 %v831_v0  ;;  %v639_v9 = vpack.c.bf16 %v146_v8, %v145_v7  ;;  %v642_v12 = vpack.c.bf16 %v148_v11, %v147_v10  ;;  %v414_v14 = vld [vmem:[%s1014_s4] ss:$0 sm:$0xff] }
  0x6c   :  { %608 = vmatprep.subr.bf16.mxu1 %v831_v0 }
  0x6e   :  { %586 = vmatpush3.bf16.msra.mxu0 %v585_v30 }
  0x6f   :  { %610 = vmatpush3.bf16.msra.mxu1 %v609_v31  ;;  %587 = vmatprep.subr.bf16.mxu0 %v831_v0 }
  0x70   :  { %611 = vmatprep.subr.bf16.mxu1 %v831_v0 }
  0x72   :  { %589 = vmatpush3.bf16.msra.mxu0 %v588_v36 }
  0x73   :  { %613 = vmatpush3.bf16.msra.mxu1 %v612_v37  ;;  %590 = vmatprep.subr.bf16.mxu0 %v831_v0 }
  0x74   :  { %614 = vmatprep.subr.bf16.mxu1 %v831_v0 }
  0x76   :  { %592 = vmatpush3.bf16.msra.mxu0 %v591_v42 }
  0x77   :  { %616 = vmatpush3.bf16.msra.mxu1 %v615_v43  ;;  %593 = vmatprep.subr.bf16.mxu0 %v831_v0 }
  0x78   :  { %617 = vmatprep.subr.bf16.mxu1 %v831_v0 }
  0x7a   :  { %595 = vmatpush3.bf16.msra.mxu0 %v594_v48 }
  0x7b   :  { %619 = vmatpush3.bf16.msra.mxu1 %v618_v49  ;;  %620 = vmatprep.subr.bf16.mxu0 %v831_v0 }
  0x7d   :  { %500 = vmatmul.mubr.f32.vlgmr.msra.gmra.mrb[0].mxu0 %v98_v50 }
  0x7e   :  { %535 = vmatmul.mubr.f32.vlgmr.msra.gmra.mrb[0].mxu1 %v151_v51  ;;  %569 = vmatprep.mubr.msk.f32.mxu0 %vm832_vm0, %v833_v1  ;;  %v141_v1 = vld [vmem:[#allocation10 + $0x40] sm:$0xff] }
  0x7f   :  { %622 = vmatpush3.bf16.msra.mxu0 %v621_v54  ;;  %v633_v3 = vpack.c.bf16 %v142_v2, %v141_v1 }
  0x80   :  { %623 = vmatprep.subr.bf16.mxu0 %v831_v0 }
  0x83   :  { %625 = vmatpush3.bf16.msra.mxu0 %v624_v57 }
  0x84   :  { %626 = vmatprep.subr.bf16.mxu0 %v831_v0 }
  0x87   :  { %628 = vmatpush3.bf16.msra.mxu0 %v627_v60 }
  0x88   :  { %629 = vmatprep.subr.bf16.mxu0 %v831_v0 }
  0x8b   :  { %631 = vmatpush3.bf16.msra.mxu0 %v630_v63 }
  0x8c   :  { %632 = vmatprep.subr.bf16.mxu0 %v831_v0 }
  0x8f   :  { %634 = vmatpush3.bf16.msra.mxu0 %v633_v3 }
  0x90   :  { %635 = vmatprep.subr.bf16.mxu0 %v831_v0 }
  0x93   :  { %637 = vmatpush3.bf16.msra.mxu0 %v636_v6 }
  0x94   :  { %638 = vmatprep.subr.bf16.mxu0 %v831_v0 }
  0x97   :  { %640 = vmatpush3.bf16.msra.mxu0 %v639_v9 }
  0x98   :  { %641 = vmatprep.subr.bf16.mxu0 %v831_v0 }
  0x9b   :  { %643 = vmatpush3.bf16.msra.mxu0 %v642_v12 }
 0x150   :  { %v218_v13 = vpop.f32.mrb[0].mxu0 }
 0x151   :  { %v288_v15 = vpop.f32.mrb[0].mxu1  ;;  %v501_v16 = vpop.f32.mrb[1].mxu0 }
 0x152   :  { %v289_v17 = vadd.f32 %v288_v15, %v218_v13  ;;  %v536_v18 = vpop.f32.mrb[1].mxu1 }
 0x154   :  { %v298_v19 = vadd.f32 %v414_v14, %v289_v17 }
 0x156   :  { %v299_v20 = vsub.f32 0.0, %v298_v19 }
 0x158   :  { %v300_v21 = vmul.f32 1.442695, %v299_v20 }
 0x15a   :  { %656 = vpow2.f32 %v300_v21 }
 0x164   :  { %v657_v22 = vpop.eup %656 }
 0x165   :  { %v302_v23 = vadd.f32 1.0, %v657_v22 }
 0x167   :  { %658 = vrcp.f32 %v302_v23 }
 0x171   :  { %v659_v0 = vpop.eup %658 }
 0x172   :  { %382 = vst [vmem:[#allocation12] sm:$0xff] %v659_v0  ;;  %570 = vmatmul.mubr.f32.vlgmr.msra.gmra.mrb[2].mxu0 %v659_v0 }
 0x173   :  { %781 = shalt.err (!%p778_p2)
}
 0x174   :  { %s782_s23 = scalar_lea.hbm %s1018_s8, 128 }
 0x175   :  { %p783_p3 = scmp.ne.s32.totalorder %s1018_s8, %s782_s23  ;;  %p786_p4 = scmp.lt.u32.totalorder %s782_s23, %s1018_s8 }
 0x177   :  { %p788_p5 = pnand %p786_p4, %p783_p3 }
 0x179   :  { %791 = shalt.err (!%p788_p5)
}
 0x17a   :  { %402 = dma.vmem_to_hbm [thread:$0]  %s400_s19, 128, %s1018_s8, [#allocation13]   ;;  %v415_v24 = vld [vmem:[%s1016_s6] ss:$0 sm:$0xff] }
 0x17b   :  { %s835_s20 = smov [#allocation11]  }
 0x17c   :  { %s389_s10 = sshll.u32 %s835_s20, 4  ;;  %s390_s10 = int_to_ptr.vmem [resolvable:$true] %s389_s10 }
 0x17d   :  { %s792_s11 = scalar_lea.vmem %s390_s10, 128  ;;  %p797_p7 = scmp.lt.s32.totalorder %s390_s10, %s390_s10 }
 0x17e   :  { %p793_p6 = scmp.ne.s32.totalorder %s390_s10, %s792_s11  ;;  %p798_p8 = scmp.lt.s32.totalorder %s792_s11, %s792_s11 }
 0x180   :  { %p799_p9 = por %p798_p8, %p797_p7 }
 0x182   :  { %p800_p10 = pnand %p799_p9, %p793_p6 }
 0x245   :  { %v377_v25 = vpop.f32.mrb[2].mxu0 }
 0x246   :  { %v378_v26 = vadd.f32 %v415_v24, %v377_v25  ;;  %v571_v27 = vpop.f32.mrb[3].mxu0 }
 0x248   :  { %381 = vst [vmem:[#allocation11] sm:$0xff] %v378_v26 }
 0x249   :  { %803 = shalt.err (!%p800_p10)
}
 0x24a   :  { %s804_s13 = scalar_lea.hbm %s1017_s7, 128 }
 0x24b   :  { %p805_p11 = scmp.ne.s32.totalorder %s1017_s7, %s804_s13  ;;  %p808_p12 = scmp.lt.u32.totalorder %s804_s13, %s1017_s7 }
 0x24d   :  { %p810_p13 = pnand %p808_p12, %p805_p11 }
 0x24f   :  { %813 = shalt.err (!%p810_p13)
}
 0x250   :  { %392 = dma.vmem_to_hbm [thread:$0]  %s390_s10, 128, %s1017_s7, [#allocation4]  }
 0x251   :  { %820 = dma.done.wait [#allocation4], 128  }
 0x252   :  { %821 = vsyncadd [#allocation4], 4294967168 }
 0x253   :  { %822 = dma.done.wait [#allocation13], 128  }
 0x254   :  { %823 = vsyncadd [#allocation13], 4294967168 }
 0x255   :  { %409 = vsyncpa [#allocation3], 1 }
 0x256   :  { %410 = vsyncpa [#allocation6], 1 }
 0x257   :  { %411 = vsyncpa [#allocation9], 1 }
 0x258   :  { %412 = vsyncpa [#allocation4], 1 }
 0x259   :  { %413 = vsyncpa [#allocation13], 1 }

</bundles_post_ra>
